<compile_context>
chip_gen: v6e
topology: v6e:2x2x1
jax: 0.10.0
libtpu: 0.0.40
codegen_flags: <defaults>
</compile_context>

<pallas_src>
import jax
import jax.numpy as jnp
from jax.experimental import pallas as pl
from jax.experimental.pallas import tpu as pltpu


def _round_up(x: int, m: int) -> int:
    return ((x + m - 1) // m) * m


# ----------------------------------------------------------------------------- kernel
def discrete_actor_kernel(obs_ref, w1_ref, b1_ref, w2_ref, b2_ref,
                          w3_ref, b3_ref, out_ref):
    """Fused 3-layer MLP on one batch tile: (Linear+ReLU) x2 + logits Linear."""
    x = obs_ref[...].astype(w1_ref.dtype)                                # f32 -> bf16 (VPU, cheap)

    h1 = jnp.dot(x, w1_ref[...], preferred_element_type=jnp.float32)    # MXU, f32 acc
    h1 = jnp.maximum(h1 + b1_ref[...], 0.0).astype(w2_ref.dtype)        # f32 epilogue -> bf16

    h2 = jnp.dot(h1, w2_ref[...], preferred_element_type=jnp.float32)
    h2 = jnp.maximum(h2 + b2_ref[...], 0.0).astype(w3_ref.dtype)

    logits = jnp.dot(h2, w3_ref[...], preferred_element_type=jnp.float32) + b3_ref[...]
    out_ref[...] = logits.astype(out_ref.dtype)


# ------------------------------------------------------------------- one-time weight prep
def prepare_discrete_actor_params(params, *, compute_dtype=jnp.bfloat16, mxu_align=None):
    """Cast weights to compute_dtype, biases to f32 (1, N), pad hidden dim.

    Call ONCE and cache the result; padded/casted weights are reused every forward.
    Accepts 1-D or (1, N) biases.
    """
    w1, b1, w2, b2, w3, b3 = params
    w1 = jnp.asarray(w1)
    obs_dim, hidden = w1.shape
    out_dim = jnp.asarray(w3).shape[1]

    if mxu_align is None:
        # v6e/v7x MXUs are 2x256x256 -> 256-aligned contraction dims once the layer is
        # big enough; 128 is already native for v5e's 4x128x128 MXU.
        mxu_align = 256 if hidden >= 256 else 128
    hid_p = hidden if hidden < 128 else _round_up(hidden, mxu_align)

    def pad_w(w, rows, cols):
        w = jnp.asarray(w, compute_dtype)
        return jnp.pad(w, ((0, rows - w.shape[0]), (0, cols - w.shape[1])))

    def pad_b(b, width):
        b = jnp.asarray(b, jnp.float32).reshape(1, -1)
        return jnp.pad(b, ((0, 0), (0, width - b.shape[1])))

    # Padded hidden columns of w1/b1 produce exactly 0 after ReLU, and padded rows of
    # w2/w3 contribute 0 to the next layer, so real outputs are unchanged.
    return (
        pad_w(w1, obs_dim, hid_p), pad_b(b1, hid_p),
        pad_w(w2, hid_p, hid_p), pad_b(b2, hid_p),
        pad_w(w3, hid_p, out_dim), pad_b(b3, out_dim),
    )


def _vmem_budget_cap() -> int:
    """~85% of this chip's physical VMEM (64 MiB on v7x, 128 MiB on v5e/v6e)."""
    cap = 64 * 1024 * 1024
    try:
        cap = int(pltpu.get_tpu_info().vmem_capacity_bytes)
    except Exception:
        pass
    return int(cap * 0.85)


# ------------------------------------------------------------------------------ forward
def discrete_actor_forward(obs, prepared_params, act_dim, num_actions_per_dim,
                           *, tile_b=512, out_dtype=jnp.float32):
    """Batch-tiled fused MLP; returns (B, act_dim, num_actions_per_dim) logits."""
    w1, b1, w2, b2, w3, b3 = prepared_params
    B, obs_dim = obs.shape
    assert w1.shape[0] == obs_dim
    hid_p = w1.shape[1]
    out_dim = w3.shape[1]
    assert out_dim == act_dim * num_actions_per_dim

    w_isz = jnp.dtype(w1.dtype).itemsize
    obs_isz = jnp.dtype(obs.dtype).itemsize
    out_isz = jnp.dtype(out_dtype).itemsize

    weight_bytes = ((obs_dim * hid_p + hid_p * hid_p + hid_p * out_dim) * w_isz
                    + (2 * hid_p + out_dim) * 4)                      # resident weights + f32 biases

    def vmem_needed(tb, weight_bufs):
        stream = 2 * tb * (obs_dim * obs_isz + out_dim * out_isz)     # double-buffered batch tiles
        interm = tb * (2 * hid_p * (4 + w_isz) + out_dim * 4)         # f32 accs + bf16 copies
        return weight_bufs * weight_bytes + stream + interm

    cap = _vmem_budget_cap()

    # ---- batch-tile selection: full-dim block if B fits, else >=4 tiles, mult. of 16 ----
    if B <= tile_b:
        tb = B                                                        # block == full dim: always legal
    else:
        tb = min(tile_b, _round_up(pl.cdiv(B, 4), 16))                # >=4 tiles -> megacore + pipelining
        tb = max(16, (tb // 16) * 16)                                 # bf16-native (16,128) sublane tile
    while tb > 16 and vmem_needed(tb, 2) > cap:                       # auto-shrink under VMEM pressure
        tb = max(16, ((tb // 2) // 16) * 16)
    tb = min(tb, B)

    grid = (pl.cdiv(B, tb),)
    vmem_limit = int(min(cap, max(32 * 1024 * 1024, int(1.25 * vmem_needed(tb, 2)))))

    flops = 2 * B * (obs_dim * hid_p + hid_p * hid_p + hid_p * out_dim)
    bytes_accessed = B * obs_dim * obs_isz + weight_bytes + B * out_dim * out_isz
    cost = pl.CostEstimate(flops=int(flops), transcendentals=0,
                           bytes_accessed=int(bytes_accessed))

    def _call(single_buffer_weights):
        def w_spec(shape):
            if single_buffer_weights:
                # Constant index map -> fetched once; a single buffer halves weight VMEM
                # (matters on v7x's 64 MiB/TC with both cores holding the full weight set).
                return pl.BlockSpec(shape, lambda i: (0, 0), pipeline_mode=pl.Buffered(1))
            return pl.BlockSpec(shape, lambda i: (0, 0))

        grid_spec = pltpu.PrefetchScalarGridSpec(
            num_scalar_prefetch=0,
            grid=grid,
            in_specs=[
                pl.BlockSpec((tb, obs_dim), lambda i: (i, 0)),        # streamed batch tile (f32)
                w_spec((obs_dim, hid_p)), w_spec((1, hid_p)),         # resident weights / biases
                w_spec((hid_p, hid_p)), w_spec((1, hid_p)),
                w_spec((hid_p, out_dim)), w_spec((1, out_dim)),
            ],
            out_specs=pl.BlockSpec((tb, out_dim), lambda i: (i, 0)),
        )
        return pl.pallas_call(
            discrete_actor_kernel,
            out_shape=jax.ShapeDtypeStruct((B, out_dim), out_dtype),
            grid_spec=grid_spec,
            compiler_params=pltpu.CompilerParams(
                dimension_semantics=("parallel",),                    # megacore sharding on v7x
                vmem_limit_bytes=vmem_limit,
            ),
            cost_estimate=cost,
        )(obs, w1, b1, w2, b2, w3, b3)

    try:
        logits_flat = _call(single_buffer_weights=hasattr(pl, "Buffered"))
    except Exception:
        logits_flat = _call(single_buffer_weights=False)              # safe fallback: default buffering

    # Contiguous (B, out_dim) -> (B, act_dim, A) reshape is free (no copy).
    return logits_flat.reshape(B, act_dim, num_actions_per_dim)


# --------------------------------------------------------------------------------- init
def init_linear(key, fan_in, fan_out):
    """Deterministic init mimicking PyTorch nn.Linear default: U(-1/sqrt(fan_in), ...)."""
    kw, kb = jax.random.split(key)
    bound = 1.0 / (fan_in ** 0.5)
    w = jax.random.uniform(kw, (fan_in, fan_out), jnp.float32, -bound, bound)
    b = jax.random.uniform(kb, (1, fan_out), jnp.float32, -bound, bound)
    return w, b


if __name__ == "__main__":
    # Small, module-consistent shapes.
    B = 2
    obs_dim = 32
    hidden_size = 32
    act_dim = 4
    num_actions_per_dim = 4

    key = jax.random.PRNGKey(0)
    k_obs, k1, k2, k3 = jax.random.split(key, 4)

    obs = jax.random.normal(k_obs, (B, obs_dim), jnp.float32)

    w1, b1 = init_linear(k1, obs_dim, hidden_size)
    w2, b2 = init_linear(k2, hidden_size, hidden_size)
    w3, b3 = init_linear(k3, hidden_size, act_dim * num_actions_per_dim)

    # One-time weight prep (cast/pad) -- cache and reuse across forward calls.
    prepared = prepare_discrete_actor_params((w1, b1, w2, b2, w3, b3))

    logits = discrete_actor_forward(obs, prepared, act_dim, num_actions_per_dim)
    jax.block_until_ready(logits)

    # Reference with the same bf16-operand / f32-accumulate math as the kernel.
    bf = jnp.bfloat16
    h1 = jnp.maximum(jnp.dot(obs.astype(bf), w1.astype(bf),
                             preferred_element_type=jnp.float32) + b1, 0.0)
    h2 = jnp.maximum(jnp.dot(h1.astype(bf), w2.astype(bf),
                             preferred_element_type=jnp.float32) + b2, 0.0)
    ref = (jnp.dot(h2.astype(bf), w3.astype(bf),
                   preferred_element_type=jnp.float32) + b3)
    ref = ref.reshape(B, act_dim, num_actions_per_dim)

    # Full-f32 reference (PyTorch semantics) -- report bf16 matmul drift.
    h1f = jnp.maximum(obs @ w1 + b1, 0.0)
    h2f = jnp.maximum(h1f @ w2 + b2, 0.0)
    ref_f32 = (h2f @ w3 + b3).reshape(B, act_dim, num_actions_per_dim)

    assert logits.shape == (B, act_dim, num_actions_per_dim)
    assert jnp.allclose(logits, ref, atol=1e-3, rtol=1e-3), \
        f"max abs err vs bf16-matched ref: {jnp.max(jnp.abs(logits - ref))}"
    _bf16_drift = float(jnp.max(jnp.abs(logits - ref_f32)))  # informational: bf16-vs-f32 logits drift

    # TODO(synk): sample() (Categorical sampling / log_prob) is stochastic policy-sampling
    # logic kept outside the kernel; only forward() is implemented.
    print("KERNEL_OK")
</pallas_src>

<mosaic_0001>
module attributes {stable_mosaic.version = 11 : i64} {
  func.func @discrete_actor_kernel(%arg0: i32, %arg1: memref<2x32xf32, #tpu.memory_space<vmem>>, %arg2: memref<32x32xbf16, #tpu.memory_space<vmem>>, %arg3: memref<1x32xf32, #tpu.memory_space<vmem>>, %arg4: memref<32x32xbf16, #tpu.memory_space<vmem>>, %arg5: memref<1x32xf32, #tpu.memory_space<vmem>>, %arg6: memref<32x16xbf16, #tpu.memory_space<vmem>>, %arg7: memref<1x16xf32, #tpu.memory_space<vmem>>, %arg8: memref<2x16xf32, #tpu.memory_space<vmem>>) attributes {dimension_semantics = [#tpu.dimension_semantics<parallel>], iteration_bounds = array<i64: 1>, scalar_prefetch = 0 : i64, scratch_operands = 0 : i64, tpu.core_type = #tpu.core_type<tc>, window_params = [{transform_indices = @transform_0, window_bounds = array<i64: 2, 32>}, {pipeline_mode = #tpu.pipeline_mode<synchronous>, transform_indices = @transform_1, window_bounds = array<i64: 32, 32>}, {pipeline_mode = #tpu.pipeline_mode<synchronous>, transform_indices = @transform_2, window_bounds = array<i64: 1, 32>}, {pipeline_mode = #tpu.pipeline_mode<synchronous>, transform_indices = @transform_3, window_bounds = array<i64: 32, 32>}, {pipeline_mode = #tpu.pipeline_mode<synchronous>, transform_indices = @transform_4, window_bounds = array<i64: 1, 32>}, {pipeline_mode = #tpu.pipeline_mode<synchronous>, transform_indices = @transform_5, window_bounds = array<i64: 32, 16>}, {pipeline_mode = #tpu.pipeline_mode<synchronous>, transform_indices = @transform_6, window_bounds = array<i64: 1, 16>}, {transform_indices = @transform_7, window_bounds = array<i64: 2, 16>}]} {
    %c0 = arith.constant 0 : index
    %c0_0 = arith.constant 0 : index
    %0 = vector.load %arg1[%c0, %c0_0] : memref<2x32xf32, #tpu.memory_space<vmem>>, vector<2x32xf32>
    %1 = arith.truncf %0 : vector<2x32xf32> to vector<2x32xbf16>
    %c0_1 = arith.constant 0 : index
    %c0_2 = arith.constant 0 : index
    %2 = vector.load %arg2[%c0_1, %c0_2] : memref<32x32xbf16, #tpu.memory_space<vmem>>, vector<32x32xbf16>
    %cst = arith.constant dense<0.000000e+00> : vector<2x32xf32>
    %3 = tpu.matmul %1, %2, %cst {dimension_numbers = #tpu.dot_dimension_numbers<[1], [0], [0], [1], [0, 0, 1, 1], [], []>} : vector<2x32xbf16>, vector<32x32xbf16>, vector<2x32xf32> -> vector<2x32xf32>
    %c0_3 = arith.constant 0 : index
    %c0_4 = arith.constant 0 : index
    %4 = vector.load %arg3[%c0_3, %c0_4] : memref<1x32xf32, #tpu.memory_space<vmem>>, vector<1x32xf32>
    %5 = vector.broadcast %4 : vector<1x32xf32> to vector<2x32xf32>
    %6 = arith.addf %3, %5 : vector<2x32xf32>
    %cst_5 = arith.constant 0.000000e+00 : f32
    %7 = vector.broadcast %cst_5 : f32 to vector<2x32xf32>
    %8 = arith.maximumf %6, %7 : vector<2x32xf32>
    %9 = arith.truncf %8 : vector<2x32xf32> to vector<2x32xbf16>
    %c0_6 = arith.constant 0 : index
    %c0_7 = arith.constant 0 : index
    %10 = vector.load %arg4[%c0_6, %c0_7] : memref<32x32xbf16, #tpu.memory_space<vmem>>, vector<32x32xbf16>
    %cst_8 = arith.constant dense<0.000000e+00> : vector<2x32xf32>
    %11 = tpu.matmul %9, %10, %cst_8 {dimension_numbers = #tpu.dot_dimension_numbers<[1], [0], [0], [1], [0, 0, 1, 1], [], []>} : vector<2x32xbf16>, vector<32x32xbf16>, vector<2x32xf32> -> vector<2x32xf32>
    %c0_9 = arith.constant 0 : index
    %c0_10 = arith.constant 0 : index
    %12 = vector.load %arg5[%c0_9, %c0_10] : memref<1x32xf32, #tpu.memory_space<vmem>>, vector<1x32xf32>
    %13 = vector.broadcast %12 : vector<1x32xf32> to vector<2x32xf32>
    %14 = arith.addf %11, %13 : vector<2x32xf32>
    %cst_11 = arith.constant 0.000000e+00 : f32
    %15 = vector.broadcast %cst_11 : f32 to vector<2x32xf32>
    %16 = arith.maximumf %14, %15 : vector<2x32xf32>
    %17 = arith.truncf %16 : vector<2x32xf32> to vector<2x32xbf16>
    %c0_12 = arith.constant 0 : index
    %c0_13 = arith.constant 0 : index
    %18 = vector.load %arg6[%c0_12, %c0_13] : memref<32x16xbf16, #tpu.memory_space<vmem>>, vector<32x16xbf16>
    %cst_14 = arith.constant dense<0.000000e+00> : vector<2x16xf32>
    %19 = tpu.matmul %17, %18, %cst_14 {dimension_numbers = #tpu.dot_dimension_numbers<[1], [0], [0], [1], [0, 0, 1, 1], [], []>} : vector<2x32xbf16>, vector<32x16xbf16>, vector<2x16xf32> -> vector<2x16xf32>
    %c0_15 = arith.constant 0 : index
    %c0_16 = arith.constant 0 : index
    %20 = vector.load %arg7[%c0_15, %c0_16] : memref<1x16xf32, #tpu.memory_space<vmem>>, vector<1x16xf32>
    %21 = vector.broadcast %20 : vector<1x16xf32> to vector<2x16xf32>
    %22 = arith.addf %19, %21 : vector<2x16xf32>
    %c0_17 = arith.constant 0 : index
    %c0_18 = arith.constant 0 : index
    %23 = vector.load %arg8[%c0_17, %c0_18] : memref<2x16xf32, #tpu.memory_space<vmem>>, vector<2x16xf32>
    tpu.vector_store %arg8[%c0_17, %c0_18], %22 {strides = array<i32>} : memref<2x16xf32, #tpu.memory_space<vmem>>, vector<2x16xf32>,
    return
  }
  func.func @transform_0(%arg0: i32) -> (i32, i32) {
    %c0_i32 = arith.constant 0 : i32
    %c0_i32_0 = arith.constant 0 : i32
    return %arg0, %c0_i32 : i32, i32
  }
  func.func @transform_1(%arg0: i32) -> (i32, i32) {
    %c0_i32 = arith.constant 0 : i32
    %c0_i32_0 = arith.constant 0 : i32
    %c0_i32_1 = arith.constant 0 : i32
    return %c0_i32, %c0_i32_0 : i32, i32
  }
  func.func @transform_2(%arg0: i32) -> (i32, i32) {
    %c0_i32 = arith.constant 0 : i32
    %c0_i32_0 = arith.constant 0 : i32
    %c0_i32_1 = arith.constant 0 : i32
    return %c0_i32, %c0_i32_0 : i32, i32
  }
  func.func @transform_3(%arg0: i32) -> (i32, i32) {
    %c0_i32 = arith.constant 0 : i32
    %c0_i32_0 = arith.constant 0 : i32
    %c0_i32_1 = arith.constant 0 : i32
    return %c0_i32, %c0_i32_0 : i32, i32
  }
  func.func @transform_4(%arg0: i32) -> (i32, i32) {
    %c0_i32 = arith.constant 0 : i32
    %c0_i32_0 = arith.constant 0 : i32
    %c0_i32_1 = arith.constant 0 : i32
    return %c0_i32, %c0_i32_0 : i32, i32
  }
  func.func @transform_5(%arg0: i32) -> (i32, i32) {
    %c0_i32 = arith.constant 0 : i32
    %c0_i32_0 = arith.constant 0 : i32
    %c0_i32_1 = arith.constant 0 : i32
    return %c0_i32, %c0_i32_0 : i32, i32
  }
  func.func @transform_6(%arg0: i32) -> (i32, i32) {
    %c0_i32 = arith.constant 0 : i32
    %c0_i32_0 = arith.constant 0 : i32
    %c0_i32_1 = arith.constant 0 : i32
    return %c0_i32, %c0_i32_0 : i32, i32
  }
  func.func @transform_7(%arg0: i32) -> (i32, i32) {
    %c0_i32 = arith.constant 0 : i32
    %c0_i32_0 = arith.constant 0 : i32
    return %arg0, %c0_i32 : i32, i32
  }
}

module attributes {stable_mosaic.version = 11 : i64} {
  func.func @discrete_actor_kernel(%arg0: i32, %arg1: memref<2x32xf32, #tpu.memory_space<vmem>>, %arg2: memref<32x32xbf16, #tpu.memory_space<vmem>>, %arg3: memref<1x32xf32, #tpu.memory_space<vmem>>, %arg4: memref<32x32xbf16, #tpu.memory_space<vmem>>, %arg5: memref<1x32xf32, #tpu.memory_space<vmem>>, %arg6: memref<32x16xbf16, #tpu.memory_space<vmem>>, %arg7: memref<1x16xf32, #tpu.memory_space<vmem>>, %arg8: memref<2x16xf32, #tpu.memory_space<vmem>>) attributes {dimension_semantics = [#tpu.dimension_semantics<parallel>], iteration_bounds = array<i64: 1>, scalar_prefetch = 0 : i64, scratch_operands = 0 : i64, tpu.core_type = #tpu.core_type<tc>, window_params = [{transform_indices = @transform_0, window_bounds = array<i64: 2, 32>}, {pipeline_mode = #tpu.pipeline_mode<synchronous>, transform_indices = @transform_1, window_bounds = array<i64: 32, 32>}, {pipeline_mode = #tpu.pipeline_mode<synchronous>, transform_indices = @transform_2, window_bounds = array<i64: 1, 32>}, {pipeline_mode = #tpu.pipeline_mode<synchronous>, transform_indices = @transform_3, window_bounds = array<i64: 32, 32>}, {pipeline_mode = #tpu.pipeline_mode<synchronous>, transform_indices = @transform_4, window_bounds = array<i64: 1, 32>}, {pipeline_mode = #tpu.pipeline_mode<synchronous>, transform_indices = @transform_5, window_bounds = array<i64: 32, 16>}, {pipeline_mode = #tpu.pipeline_mode<synchronous>, transform_indices = @transform_6, window_bounds = array<i64: 1, 16>}, {transform_indices = @transform_7, window_bounds = array<i64: 2, 16>}]} {
    %c0 = arith.constant 0 : index
    %c0_0 = arith.constant 0 : index
    %0 = vector.load %arg1[%c0, %c0_0] : memref<2x32xf32, #tpu.memory_space<vmem>>, vector<2x32xf32>
    %1 = arith.truncf %0 : vector<2x32xf32> to vector<2x32xbf16>
    %c0_1 = arith.constant 0 : index
    %c0_2 = arith.constant 0 : index
    %2 = vector.load %arg2[%c0_1, %c0_2] : memref<32x32xbf16, #tpu.memory_space<vmem>>, vector<32x32xbf16>
    %cst = arith.constant dense<0.000000e+00> : vector<2x32xf32>
    %3 = tpu.matmul %1, %2, %cst {dimension_numbers = #tpu.dot_dimension_numbers<[1], [0], [0], [1], [0, 0, 1, 1], [], []>} : vector<2x32xbf16>, vector<32x32xbf16>, vector<2x32xf32> -> vector<2x32xf32>
    %c0_3 = arith.constant 0 : index
    %c0_4 = arith.constant 0 : index
    %4 = vector.load %arg3[%c0_3, %c0_4] : memref<1x32xf32, #tpu.memory_space<vmem>>, vector<1x32xf32>
    %5 = vector.broadcast %4 : vector<1x32xf32> to vector<2x32xf32>
    %6 = arith.addf %3, %5 : vector<2x32xf32>
    %cst_5 = arith.constant 0.000000e+00 : f32
    %7 = vector.broadcast %cst_5 : f32 to vector<2x32xf32>
    %8 = arith.maximumf %6, %7 : vector<2x32xf32>
    %9 = arith.truncf %8 : vector<2x32xf32> to vector<2x32xbf16>
    %c0_6 = arith.constant 0 : index
    %c0_7 = arith.constant 0 : index
    %10 = vector.load %arg4[%c0_6, %c0_7] : memref<32x32xbf16, #tpu.memory_space<vmem>>, vector<32x32xbf16>
    %cst_8 = arith.constant dense<0.000000e+00> : vector<2x32xf32>
    %11 = tpu.matmul %9, %10, %cst_8 {dimension_numbers = #tpu.dot_dimension_numbers<[1], [0], [0], [1], [0, 0, 1, 1], [], []>} : vector<2x32xbf16>, vector<32x32xbf16>, vector<2x32xf32> -> vector<2x32xf32>
    %c0_9 = arith.constant 0 : index
    %c0_10 = arith.constant 0 : index
    %12 = vector.load %arg5[%c0_9, %c0_10] : memref<1x32xf32, #tpu.memory_space<vmem>>, vector<1x32xf32>
    %13 = vector.broadcast %12 : vector<1x32xf32> to vector<2x32xf32>
    %14 = arith.addf %11, %13 : vector<2x32xf32>
    %cst_11 = arith.constant 0.000000e+00 : f32
    %15 = vector.broadcast %cst_11 : f32 to vector<2x32xf32>
    %16 = arith.maximumf %14, %15 : vector<2x32xf32>
    %17 = arith.truncf %16 : vector<2x32xf32> to vector<2x32xbf16>
    %c0_12 = arith.constant 0 : index
    %c0_13 = arith.constant 0 : index
    %18 = vector.load %arg6[%c0_12, %c0_13] : memref<32x16xbf16, #tpu.memory_space<vmem>>, vector<32x16xbf16>
    %cst_14 = arith.constant dense<0.000000e+00> : vector<2x16xf32>
    %19 = tpu.matmul %17, %18, %cst_14 {dimension_numbers = #tpu.dot_dimension_numbers<[1], [0], [0], [1], [0, 0, 1, 1], [], []>} : vector<2x32xbf16>, vector<32x16xbf16>, vector<2x16xf32> -> vector<2x16xf32>
    %c0_15 = arith.constant 0 : index
    %c0_16 = arith.constant 0 : index
    %20 = vector.load %arg7[%c0_15, %c0_16] : memref<1x16xf32, #tpu.memory_space<vmem>>, vector<1x16xf32>
    %21 = vector.broadcast %20 : vector<1x16xf32> to vector<2x16xf32>
    %22 = arith.addf %19, %21 : vector<2x16xf32>
    %c0_17 = arith.constant 0 : index
    %c0_18 = arith.constant 0 : index
    %23 = vector.load %arg8[%c0_17, %c0_18] : memref<2x16xf32, #tpu.memory_space<vmem>>, vector<2x16xf32>
    tpu.vector_store %arg8[%c0_17, %c0_18], %22 {strides = array<i32>} : memref<2x16xf32, #tpu.memory_space<vmem>>, vector<2x16xf32>,
    return
  }
  func.func @transform_0(%arg0: i32) -> (i32, i32) {
    %c0_i32 = arith.constant 0 : i32
    %c0_i32_0 = arith.constant 0 : i32
    return %arg0, %c0_i32 : i32, i32
  }
  func.func @transform_1(%arg0: i32) -> (i32, i32) {
    %c0_i32 = arith.constant 0 : i32
    %c0_i32_0 = arith.constant 0 : i32
    %c0_i32_1 = arith.constant 0 : i32
    return %c0_i32, %c0_i32_0 : i32, i32
  }
  func.func @transform_2(%arg0: i32) -> (i32, i32) {
    %c0_i32 = arith.constant 0 : i32
    %c0_i32_0 = arith.constant 0 : i32
    %c0_i32_1 = arith.constant 0 : i32
    return %c0_i32, %c0_i32_0 : i32, i32
  }
  func.func @transform_3(%arg0: i32) -> (i32, i32) {
    %c0_i32 = arith.constant 0 : i32
    %c0_i32_0 = arith.constant 0 : i32
    %c0_i32_1 = arith.constant 0 : i32
    return %c0_i32, %c0_i32_0 : i32, i32
  }
  func.func @transform_4(%arg0: i32) -> (i32, i32) {
    %c0_i32 = arith.constant 0 : i32
    %c0_i32_0 = arith.constant 0 : i32
    %c0_i32_1 = arith.constant 0 : i32
    return %c0_i32, %c0_i32_0 : i32, i32
  }
  func.func @transform_5(%arg0: i32) -> (i32, i32) {
    %c0_i32 = arith.constant 0 : i32
    %c0_i32_0 = arith.constant 0 : i32
    %c0_i32_1 = arith.constant 0 : i32
    return %c0_i32, %c0_i32_0 : i32, i32
  }
  func.func @transform_6(%arg0: i32) -> (i32, i32) {
    %c0_i32 = arith.constant 0 : i32
    %c0_i32_0 = arith.constant 0 : i32
    %c0_i32_1 = arith.constant 0 : i32
    return %c0_i32, %c0_i32_0 : i32, i32
  }
  func.func @transform_7(%arg0: i32) -> (i32, i32) {
    %c0_i32 = arith.constant 0 : i32
    %c0_i32_0 = arith.constant 0 : i32
    return %arg0, %c0_i32 : i32, i32
  }
}

</mosaic_0001>

<bundles_post_ra>
// kernel: tpu_custom_call.1
= control target key start
LH: loop header
LB: loop body
LE: loop exit
PB: predicated region body
PF: predicated region fallthrough
CT: control target
= control target key end

     0   :  { %12 = vsyncpa [#allocation3], 0  ;;  %s444_s0 = inlined_call_operand.vmem [shape: f32[2,32], index: 0, kind: input, shape index: {}]   ;;  %s445_s1 = inlined_call_operand.vmem [shape: bf16[32,32], index: 1, kind: input, shape index: {}]   ;;  %s446_s2 = inlined_call_operand.vmem [shape: f32[1,32], index: 2, kind: input, shape index: {}]   ;;  %s447_s3 = inlined_call_operand.hbm [shape: bf16[32,32], index: 3, kind: input, shape index: {}]   ;;  %s448_s4 = inlined_call_operand.vmem [shape: f32[1,32], index: 4, kind: input, shape index: {}]   ;;  %s449_s5 = inlined_call_operand.vmem [shape: bf16[32,16], index: 5, kind: input, shape index: {}]   ;;  %s450_s6 = inlined_call_operand.vmem [shape: f32[1,16], index: 6, kind: input, shape index: {}]   ;;  %s451_s7 = inlined_call_operand.hbm [shape: f32[2,16], index: 7, kind: output, shape index: {}]  }
   0x1   :  { %13 = vsyncpa [#allocation4], 0  ;;  %s365_s24 = smov [#allocation2]  }
   0x2   :  { %s25_s25 = sshll.u32 %s365_s24, 4  ;;  %s26_s25 = int_to_ptr.vmem [resolvable:$true] %s25_s25 }
   0x3   :  { %s329_s26 = scalar_lea.vmem %s26_s25, 256  ;;  %p334_p1 = scmp.lt.s32.totalorder %s26_s25, %s26_s25 }
   0x4   :  { %p330_p0 = scmp.ne.s32.totalorder %s26_s25, %s329_s26  ;;  %p335_p2 = scmp.lt.s32.totalorder %s329_s26, %s329_s26 }
   0x6   :  { %p336_p3 = por %p335_p2, %p334_p1 }
   0x8   :  { %p337_p4 = pnand %p336_p3, %p330_p0 }
   0xa   :  { %340 = shalt.err (!%p337_p4)
}
   0xb   :  { %s366_s27 = smov 64   ;;  %s367_s28 = smov 4  }
   0xc   :  { %31 = dma.hbm_to_vmem [thread:$0]  %s447_s3, 256, %s26_s25, [#allocation3], %s366_s27, %s366_s27, %s367_s28  }
   0xd   :  { %361 = dma.done.wait [#allocation3], 256  }
   0xe   :  { %362 = vsyncadd [#allocation3], 4294967040  ;;  %v368_v0 = vmov 0.0   ;;  %vm369_vm0 = vmmov 0   ;;  %v315_v1 = vld [vmem:[%s445_s1 + $0x8] sm:$0xff]   ;;  %v316_v2 = vld [vmem:[%s445_s1] sm:$0xff]  }
   0xf   :  { %285 = vmatprep.subr.bf16.mxu0 %v368_v0  ;;  %289 = vmatprep.mubr.msk.bf16.mxu0 %vm369_vm0, %v368_v0  ;;  %v42_v3 = vld [vmem:[%s444_s0] sm:$0x3]  ;;  %vm67_vm1 = vcmask 261120   ;;  %v317_v5 = vld [vmem:[#allocation2 + $0x8] sm:$0xff]   ;;  %s370_s20 = smov [#allocation5]   ;;  %vm247_vm2 = vcmask 123904  }
  0x10   :  { %293 = vmatprep.subr.bf16.mxu1 %v368_v0  ;;  %297 = vmatprep.mubr.msk.bf16.mxu1 %vm369_vm0, %v368_v0  ;;  %v43_v4 = vpack.c.bf16 %v42_v3, %v42_v3  ;;  %v318_v6 = vld [vmem:[#allocation2] sm:$0xff]   ;;  %v319_v7 = vld [vmem:[%s449_s5 + $0x8] sm:$0xff]  }
  0x11   :  { %286 = vmatpush3.bf16.msra.mxu0 %v315_v1  ;;  %294 = vmatpush3.bf16.msra.mxu1 %v317_v5  ;;  %v264_v8 = vld [vmem:[%s446_s2] ss:$0 sm:$0xff] }
  0x12   :  { %287 = vmatprep.subr.bf16.mxu0 %v368_v0  ;;  %295 = vmatprep.subr.bf16.mxu1 %v368_v0  ;;  %v320_v16 = vld [vmem:[%s449_s5] sm:$0xff]   ;;  %s255_s5 = sshll.u32 %s370_s20, 4  ;;  %s256_s5 = int_to_ptr.vmem [resolvable:$true] %s255_s5 }
  0x13   :  { %v268_v17 = vld [vmem:[%s448_s4] ss:$0 sm:$0xff]  ;;  %s341_s4 = scalar_lea.vmem %s256_s5, 32  ;;  %p346_p6 = scmp.lt.s32.totalorder %s256_s5, %s256_s5 }
  0x14   :  { %v272_v25 = vld [vmem:[%s450_s6] ss:$0 sm:$0xff]  ;;  %p342_p5 = scmp.ne.s32.totalorder %s256_s5, %s341_s4  ;;  %p347_p7 = scmp.lt.s32.totalorder %s341_s4, %s341_s4 }
  0x15   :  { %288 = vmatpush3.bf16.msra.mxu0 %v316_v2  ;;  %296 = vmatpush3.bf16.msra.mxu1 %v318_v6 }
  0x16   :  { %301 = vmatprep.subr.bf16.mxu0 %v368_v0  ;;  %p348_p8 = por %p347_p7, %p346_p6 }
  0x18   :  { %290 = vmatmul.mubr.msk.bf16.vlgmr.msra.gmra.mxu0 %vm67_vm1, %v43_v4  ;;  %p349_p9 = pnand %p348_p8, %p342_p5 }
  0x19   :  { %305 = vmatprep.mubr.msk.bf16.mxu0 %vm369_vm0, %v368_v0  ;;  %302 = vmatpush3.bf16.msra.mxu0 %v319_v7 }
  0x1a   :  { %303 = vmatprep.subr.bf16.mxu0 %v368_v0 }
  0x1d   :  { %304 = vmatpush3.bf16.msra.mxu0 %v320_v16 }
  0xd8   :  { %v105_v9 = vpop.f32.mrf.mxu0 }
  0xd9   :  { %v106_v10 = vadd.f32 %v264_v8, %v105_v9 }
  0xda   :  { %v291_v11 = vpop.f32.mrf.mxu0 }
  0xdb   :  { %v111_v12 = vmax.f32 %v106_v10, 0.0 }
  0xdc   :  { %v108_v13 = vpop.f32.mrf.mxu0 }
  0xdd   :  { %v112_v14 = vpack.c.bf16 %v111_v12, %v111_v12 }
  0xde   :  { %v292_v15 = vpop.f32.mrf.mxu0 }
  0xdf   :  { %298 = vmatmul.mubr.msk.bf16.vlgmr.msra.gmra.mxu1 %vm67_vm1, %v112_v14 }
 0x19f   :  { %v173_v18 = vpop.f32.mrf.mxu1 }
 0x1a0   :  { %v174_v19 = vadd.f32 %v268_v17, %v173_v18 }
 0x1a1   :  { %v299_v20 = vpop.f32.mrf.mxu1 }
 0x1a2   :  { %v179_v21 = vmax.f32 %v174_v19, 0.0 }
 0x1a3   :  { %v176_v22 = vpop.f32.mrf.mxu1 }
 0x1a4   :  { %v180_v23 = vpack.c.bf16 %v179_v21, %v179_v21 }
 0x1a5   :  { %v300_v24 = vpop.f32.mrf.mxu1 }
 0x1a6   :  { %306 = vmatmul.mubr.msk.bf16.vlgmr.msra.gmra.mxu0 %vm67_vm1, %v180_v23 }
 0x266   :  { %v241_v26 = vpop.f32.mrf.mxu0 }
 0x267   :  { %v242_v27 = vadd.f32 %v272_v25, %v241_v26 }
 0x268   :  { %v307_v28 = vpop.f32.mrf.mxu0 }
 0x269   :  { %248 = vst.msk [vmem:[#allocation5] sm:$0x3] %vm247_vm2, %v242_v27 }
 0x26a   :  { %v244_v29 = vpop.f32.mrf.mxu0 }
 0x26b   :  { %352 = shalt.err (!%p349_p9)
}
 0x26c   :  { %258 = dma.vmem_to_hbm [thread:$0]  %s256_s5, 32, %s451_s7, [#allocation4]   ;;  %v308_v30 = vpop.f32.mrf.mxu0 }
 0x26d   :  { %363 = dma.done.wait [#allocation4], 32  }
 0x26e   :  { %364 = vsyncadd [#allocation4], 4294967264 }
 0x26f   :  { %262 = vsyncpa [#allocation3], 1 }
 0x270   :  { %263 = vsyncpa [#allocation4], 1 }

// kernel: tpu_custom_call.1
= control target key start
LH: loop header
LB: loop body
LE: loop exit
PB: predicated region body
PF: predicated region fallthrough
CT: control target
= control target key end

     0   :  { %12 = vsyncpa [#allocation3], 0  ;;  %s444_s0 = inlined_call_operand.vmem [shape: f32[2,32], index: 0, kind: input, shape index: {}]   ;;  %s445_s1 = inlined_call_operand.vmem [shape: bf16[32,32], index: 1, kind: input, shape index: {}]   ;;  %s446_s2 = inlined_call_operand.vmem [shape: f32[1,32], index: 2, kind: input, shape index: {}]   ;;  %s447_s3 = inlined_call_operand.hbm [shape: bf16[32,32], index: 3, kind: input, shape index: {}]   ;;  %s448_s4 = inlined_call_operand.vmem [shape: f32[1,32], index: 4, kind: input, shape index: {}]   ;;  %s449_s5 = inlined_call_operand.vmem [shape: bf16[32,16], index: 5, kind: input, shape index: {}]   ;;  %s450_s6 = inlined_call_operand.vmem [shape: f32[1,16], index: 6, kind: input, shape index: {}]   ;;  %s451_s7 = inlined_call_operand.hbm [shape: f32[2,16], index: 7, kind: output, shape index: {}]  }
   0x1   :  { %13 = vsyncpa [#allocation4], 0  ;;  %s365_s24 = smov [#allocation2]  }
   0x2   :  { %s25_s25 = sshll.u32 %s365_s24, 4  ;;  %s26_s25 = int_to_ptr.vmem [resolvable:$true] %s25_s25 }
   0x3   :  { %s329_s26 = scalar_lea.vmem %s26_s25, 256  ;;  %p334_p1 = scmp.lt.s32.totalorder %s26_s25, %s26_s25 }
   0x4   :  { %p330_p0 = scmp.ne.s32.totalorder %s26_s25, %s329_s26  ;;  %p335_p2 = scmp.lt.s32.totalorder %s329_s26, %s329_s26 }
   0x6   :  { %p336_p3 = por %p335_p2, %p334_p1 }
   0x8   :  { %p337_p4 = pnand %p336_p3, %p330_p0 }
   0xa   :  { %340 = shalt.err (!%p337_p4)
}
   0xb   :  { %s366_s27 = smov 64   ;;  %s367_s28 = smov 4  }
   0xc   :  { %31 = dma.hbm_to_vmem [thread:$0]  %s447_s3, 256, %s26_s25, [#allocation3], %s366_s27, %s366_s27, %s367_s28  }
   0xd   :  { %361 = dma.done.wait [#allocation3], 256  }
   0xe   :  { %362 = vsyncadd [#allocation3], 4294967040  ;;  %v368_v0 = vmov 0.0   ;;  %vm369_vm0 = vmmov 0   ;;  %v315_v1 = vld [vmem:[%s445_s1 + $0x8] sm:$0xff]   ;;  %v316_v2 = vld [vmem:[%s445_s1] sm:$0xff]  }
   0xf   :  { %285 = vmatprep.subr.bf16.mxu0 %v368_v0  ;;  %289 = vmatprep.mubr.msk.bf16.mxu0 %vm369_vm0, %v368_v0  ;;  %v42_v3 = vld [vmem:[%s444_s0] sm:$0x3]  ;;  %vm67_vm1 = vcmask 261120   ;;  %v317_v5 = vld [vmem:[#allocation2 + $0x8] sm:$0xff]   ;;  %s370_s20 = smov [#allocation5]   ;;  %vm247_vm2 = vcmask 123904  }
  0x10   :  { %293 = vmatprep.subr.bf16.mxu1 %v368_v0  ;;  %297 = vmatprep.mubr.msk.bf16.mxu1 %vm369_vm0, %v368_v0  ;;  %v43_v4 = vpack.c.bf16 %v42_v3, %v42_v3  ;;  %v318_v6 = vld [vmem:[#allocation2] sm:$0xff]   ;;  %v319_v7 = vld [vmem:[%s449_s5 + $0x8] sm:$0xff]  }
  0x11   :  { %286 = vmatpush3.bf16.msra.mxu0 %v315_v1  ;;  %294 = vmatpush3.bf16.msra.mxu1 %v317_v5  ;;  %v264_v8 = vld [vmem:[%s446_s2] ss:$0 sm:$0xff] }
  0x12   :  { %287 = vmatprep.subr.bf16.mxu0 %v368_v0  ;;  %295 = vmatprep.subr.bf16.mxu1 %v368_v0  ;;  %v320_v16 = vld [vmem:[%s449_s5] sm:$0xff]   ;;  %s255_s5 = sshll.u32 %s370_s20, 4  ;;  %s256_s5 = int_to_ptr.vmem [resolvable:$true] %s255_s5 }
  0x13   :  { %v268_v17 = vld [vmem:[%s448_s4] ss:$0 sm:$0xff]  ;;  %s341_s4 = scalar_lea.vmem %s256_s5, 32  ;;  %p346_p6 = scmp.lt.s32.totalorder %s256_s5, %s256_s5 }
  0x14   :  { %v272_v25 = vld [vmem:[%s450_s6] ss:$0 sm:$0xff]  ;;  %p342_p5 = scmp.ne.s32.totalorder %s256_s5, %s341_s4  ;;  %p347_p7 = scmp.lt.s32.totalorder %s341_s4, %s341_s4 }
  0x15   :  { %288 = vmatpush3.bf16.msra.mxu0 %v316_v2  ;;  %296 = vmatpush3.bf16.msra.mxu1 %v318_v6 }
  0x16   :  { %301 = vmatprep.subr.bf16.mxu0 %v368_v0  ;;  %p348_p8 = por %p347_p7, %p346_p6 }
  0x18   :  { %290 = vmatmul.mubr.msk.bf16.vlgmr.msra.gmra.mxu0 %vm67_vm1, %v43_v4  ;;  %p349_p9 = pnand %p348_p8, %p342_p5 }
  0x19   :  { %305 = vmatprep.mubr.msk.bf16.mxu0 %vm369_vm0, %v368_v0  ;;  %302 = vmatpush3.bf16.msra.mxu0 %v319_v7 }
  0x1a   :  { %303 = vmatprep.subr.bf16.mxu0 %v368_v0 }
  0x1d   :  { %304 = vmatpush3.bf16.msra.mxu0 %v320_v16 }
  0xd8   :  { %v105_v9 = vpop.f32.mrf.mxu0 }
  0xd9   :  { %v106_v10 = vadd.f32 %v264_v8, %v105_v9 }
  0xda   :  { %v291_v11 = vpop.f32.mrf.mxu0 }
  0xdb   :  { %v111_v12 = vmax.f32 %v106_v10, 0.0 }
  0xdc   :  { %v108_v13 = vpop.f32.mrf.mxu0 }
  0xdd   :  { %v112_v14 = vpack.c.bf16 %v111_v12, %v111_v12 }
  0xde   :  { %v292_v15 = vpop.f32.mrf.mxu0 }
  0xdf   :  { %298 = vmatmul.mubr.msk.bf16.vlgmr.msra.gmra.mxu1 %vm67_vm1, %v112_v14 }
 0x19f   :  { %v173_v18 = vpop.f32.mrf.mxu1 }
 0x1a0   :  { %v174_v19 = vadd.f32 %v268_v17, %v173_v18 }
 0x1a1   :  { %v299_v20 = vpop.f32.mrf.mxu1 }
 0x1a2   :  { %v179_v21 = vmax.f32 %v174_v19, 0.0 }
 0x1a3   :  { %v176_v22 = vpop.f32.mrf.mxu1 }
 0x1a4   :  { %v180_v23 = vpack.c.bf16 %v179_v21, %v179_v21 }
 0x1a5   :  { %v300_v24 = vpop.f32.mrf.mxu1 }
 0x1a6   :  { %306 = vmatmul.mubr.msk.bf16.vlgmr.msra.gmra.mxu0 %vm67_vm1, %v180_v23 }
 0x266   :  { %v241_v26 = vpop.f32.mrf.mxu0 }
 0x267   :  { %v242_v27 = vadd.f32 %v272_v25, %v241_v26 }
 0x268   :  { %v307_v28 = vpop.f32.mrf.mxu0 }
 0x269   :  { %248 = vst.msk [vmem:[#allocation5] sm:$0x3] %vm247_vm2, %v242_v27 }
 0x26a   :  { %v244_v29 = vpop.f32.mrf.mxu0 }
 0x26b   :  { %352 = shalt.err (!%p349_p9)
}
 0x26c   :  { %258 = dma.vmem_to_hbm [thread:$0]  %s256_s5, 32, %s451_s7, [#allocation4]   ;;  %v308_v30 = vpop.f32.mrf.mxu0 }
 0x26d   :  { %363 = dma.done.wait [#allocation4], 32  }
 0x26e   :  { %364 = vsyncadd [#allocation4], 4294967264 }
 0x26f   :  { %262 = vsyncpa [#allocation3], 1 }
 0x270   :  { %263 = vsyncpa [#allocation4], 1 }

</bundles_post_ra>
